<compile_context>
chip_gen: v5e
topology: v5e:2x2
jax: 0.10.0
libtpu: 0.0.40
codegen_flags: <defaults>
</compile_context>

<pallas_src>
import jax
import jax.numpy as jnp
from jax.experimental import pallas as pl
from jax.experimental.pallas import tpu as pltpu

B, T = 2, 16
D_IN, HIDDEN, D_OUT = 32, 64, 32          # in_size == size -> residual path active
K_FSMN = 5
LEFT = (K_FSMN - 1) // 2                  # fsmn_shift = 0
RIGHT = K_FSMN - 1 - LEFT
LN_EPS = 1e-5
BT = B * T
HALO = 8                                  # sublane-aligned halo (>= LEFT and >= RIGHT)
T_PAD = T + 2 * HALO                      # padded time extent per batch in scratch


def encoder_layer_kernel(x_ref, mask_ref, w1_ref, b1_ref, g_ref, be_ref,
                         w2_ref, b2_ref, wf_ref, o_ref, pad_ref):
    x = x_ref[...]                         # (B*T, D_IN)  f32
    m = mask_ref[...]                      # (B*T, 1)     f32

    # --- FsmnFeedForward on the fused (B*T, D) view: conv1(k=1) -> LN -> ReLU -> conv2(k=1)
    h = jnp.dot(x, w1_ref[...], preferred_element_type=jnp.float32) + b1_ref[...]
    mu = jnp.mean(h, axis=-1, keepdims=True)
    var = jnp.mean((h - mu) ** 2, axis=-1, keepdims=True)
    hn = (h - mu) * jax.lax.rsqrt(var + LN_EPS) * g_ref[...] + be_ref[...]
    hn = jnp.maximum(hn, 0.0)
    ctx = jnp.dot(hn, w2_ref[...], preferred_element_type=jnp.float32) + b2_ref[...]

    # Materialize the mask broadcast once; reused for both FsmnBlock multiplies.
    mb = jnp.broadcast_to(m, (BT, D_OUT))  # (B*T, D_OUT)
    inp = ctx * mb                         # masked FSMN input

    # --- FsmnBlock: depthwise conv over time via a zero-padded VMEM scratch.
    # pad_ref: (B, T + 2*HALO, D_OUT). Halo rows stay zero, so taps see zeros
    # outside the sequence and never leak across batch boundaries.
    pad_ref[...] = jnp.zeros_like(pad_ref)
    wf = wf_ref[...]                       # (K, D_OUT) depthwise taps
    for b in range(B):                     # B == 2, static unroll; sublane-aligned store
        pad_ref[b, HALO:HALO + T, :] = inp[b * T:(b + 1) * T, :]
    for b in range(B):
        acc = jnp.zeros((T, D_OUT), jnp.float32)
        for k in range(K_FSMN):            # K static sublane-offset loads + FMAs
            acc = acc + pad_ref[b, HALO - LEFT + k:HALO - LEFT + k + T, :] * wf[k, :]
        mem = (acc + inp[b * T:(b + 1) * T, :]) * mb[b * T:(b + 1) * T, :]
        # Dropout(p=0.0) is identity; in_size == size -> residual with xs_pad.
        o_ref[b * T:(b + 1) * T, :] = mem + x[b * T:(b + 1) * T, :]


def encoder_layer(xs_pad, mask, params):
    w1, b1, g, be, w2, b2, wf = params
    # PyTorch depthwise Conv1d weight is (D, 1, K); caller must pass taps as (K, D).
    assert wf.shape == (K_FSMN, D_OUT), "FSMN taps must be transposed to (K, D_OUT)"

    x2 = xs_pad.reshape(BT, D_IN)          # fuse batch/time for the k=1 convs
    m2 = mask.reshape(BT, 1)

    out2 = pl.pallas_call(
        encoder_layer_kernel,
        out_shape=jax.ShapeDtypeStruct((BT, D_OUT), jnp.float32),
        in_specs=[pl.BlockSpec(memory_space=pltpu.MemorySpace.VMEM)] * 9,
        out_specs=pl.BlockSpec(memory_space=pltpu.MemorySpace.VMEM),
        scratch_shapes=[pltpu.VMEM((B, T_PAD, D_OUT), jnp.float32)],
    )(x2, m2, w1, b1, g, be, w2, b2, wf)
    return out2.reshape(B, T, D_OUT)


def reference(xs_pad, mask, params):
    """Pure-JAX reference of the same forward pass."""
    w1, b1, g, be, w2, b2, wf = params
    h = xs_pad @ w1 + b1
    mu = h.mean(-1, keepdims=True)
    var = ((h - mu) ** 2).mean(-1, keepdims=True)
    hn = jnp.maximum((h - mu) / jnp.sqrt(var + LN_EPS) * g + be, 0.0)
    ctx = hn @ w2 + b2
    inp = ctx * mask
    padded = jnp.pad(inp, ((0, 0), (LEFT, RIGHT), (0, 0)))
    acc = sum(padded[:, k:k + T, :] * wf[k] for k in range(K_FSMN))
    mem = (acc + inp) * mask
    return mem + xs_pad


if __name__ == "__main__":
    key = jax.random.PRNGKey(0)
    ks = jax.random.split(key, 9)

    xs_pad = jax.random.normal(ks[0], (B, T, D_IN), jnp.float32)
    # mask: (B, T, 1); batch 1 has its last 4 frames padded out.
    mask = jnp.ones((B, T, 1), jnp.float32).at[1, T - 4:, :].set(0.0)

    w1 = jax.random.normal(ks[1], (D_IN, HIDDEN), jnp.float32) * 0.1   # conv1 (k=1) weight
    b1 = jax.random.normal(ks[2], (1, HIDDEN), jnp.float32) * 0.1
    gamma = jnp.ones((1, HIDDEN), jnp.float32) + 0.05 * jax.random.normal(ks[3], (1, HIDDEN))
    beta = 0.05 * jax.random.normal(ks[4], (1, HIDDEN), jnp.float32)
    w2 = jax.random.normal(ks[5], (HIDDEN, D_OUT), jnp.float32) * 0.1  # conv2 (k=1) weight
    b2 = jax.random.normal(ks[6], (1, D_OUT), jnp.float32) * 0.1
    wf = jax.random.normal(ks[7], (K_FSMN, D_OUT), jnp.float32) * 0.1  # depthwise FSMN taps (K, D)
    params = (w1, b1, gamma, beta, w2, b2, wf)

    out = jax.block_until_ready(encoder_layer(xs_pad, mask, params))
    ref = jax.block_until_ready(reference(xs_pad, mask, params))

    assert out.shape == (B, T, D_OUT)
    assert jnp.allclose(out, ref, atol=1e-5, rtol=1e-5), \
        f"max abs err {jnp.max(jnp.abs(out - ref))}"
    print("KERNEL_OK")
</pallas_src>

<mosaic_0001>
module attributes {stable_mosaic.version = 11 : i64} {
  func.func @encoder_layer_kernel(%arg0: memref<32x32xf32, #tpu.memory_space<vmem>>, %arg1: memref<32x1xf32, #tpu.memory_space<vmem>>, %arg2: memref<32x64xf32, #tpu.memory_space<vmem>>, %arg3: memref<1x64xf32, #tpu.memory_space<vmem>>, %arg4: memref<1x64xf32, #tpu.memory_space<vmem>>, %arg5: memref<1x64xf32, #tpu.memory_space<vmem>>, %arg6: memref<64x32xf32, #tpu.memory_space<vmem>>, %arg7: memref<1x32xf32, #tpu.memory_space<vmem>>, %arg8: memref<5x32xf32, #tpu.memory_space<vmem>>, %arg9: memref<32x32xf32, #tpu.memory_space<vmem>>, %arg10: memref<2x32x32xf32, #tpu.memory_space<vmem>>) attributes {dimension_semantics = [], scalar_prefetch = 0 : i64, scratch_operands = 1 : i64, tpu.core_type = #tpu.core_type<tc>} {
    %c0 = arith.constant 0 : index
    %c0_0 = arith.constant 0 : index
    %0 = vector.load %arg0[%c0, %c0_0] : memref<32x32xf32, #tpu.memory_space<vmem>>, vector<32x32xf32>
    %c0_1 = arith.constant 0 : index
    %c0_2 = arith.constant 0 : index
    %1 = vector.load %arg1[%c0_1, %c0_2] : memref<32x1xf32, #tpu.memory_space<vmem>>, vector<32x1xf32>
    %c0_3 = arith.constant 0 : index
    %c0_4 = arith.constant 0 : index
    %2 = vector.load %arg2[%c0_3, %c0_4] : memref<32x64xf32, #tpu.memory_space<vmem>>, vector<32x64xf32>
    %cst = arith.constant dense<0.000000e+00> : vector<32x64xf32>
    %3 = tpu.matmul %0, %2, %cst {dimension_numbers = #tpu.dot_dimension_numbers<[1], [0], [0], [1], [0, 0, 1, 1], [], []>} : vector<32x32xf32>, vector<32x64xf32>, vector<32x64xf32> -> vector<32x64xf32>
    %c0_5 = arith.constant 0 : index
    %c0_6 = arith.constant 0 : index
    %4 = vector.load %arg3[%c0_5, %c0_6] : memref<1x64xf32, #tpu.memory_space<vmem>>, vector<1x64xf32>
    %5 = vector.broadcast %4 : vector<1x64xf32> to vector<32x64xf32>
    %6 = arith.addf %3, %5 : vector<32x64xf32>
    %cst_7 = arith.constant dense<0.000000e+00> : vector<32xf32>
    %7 = vector.multi_reduction <add>, %6, %cst_7 [1] : vector<32x64xf32> to vector<32xf32>
    %8 = vector.shape_cast %7 : vector<32xf32> to vector<32x1xf32>
    %cst_8 = arith.constant 6.400000e+01 : f32
    %9 = vector.broadcast %cst_8 : f32 to vector<32x1xf32>
    %10 = arith.divf %8, %9 : vector<32x1xf32>
    %11 = vector.broadcast %10 : vector<32x1xf32> to vector<32x64xf32>
    %12 = arith.subf %6, %11 : vector<32x64xf32>
    %13 = arith.mulf %12, %12 : vector<32x64xf32>
    %cst_9 = arith.constant dense<0.000000e+00> : vector<32xf32>
    %14 = vector.multi_reduction <add>, %13, %cst_9 [1] : vector<32x64xf32> to vector<32xf32>
    %15 = vector.shape_cast %14 : vector<32xf32> to vector<32x1xf32>
    %cst_10 = arith.constant 6.400000e+01 : f32
    %16 = vector.broadcast %cst_10 : f32 to vector<32x1xf32>
    %17 = arith.divf %15, %16 : vector<32x1xf32>
    %18 = vector.broadcast %10 : vector<32x1xf32> to vector<32x64xf32>
    %19 = arith.subf %6, %18 : vector<32x64xf32>
    %cst_11 = arith.constant 9.99999974E-6 : f32
    %20 = vector.broadcast %cst_11 : f32 to vector<32x1xf32>
    %21 = arith.addf %17, %20 : vector<32x1xf32>
    %22 = math.rsqrt %21 : vector<32x1xf32>
    %23 = vector.broadcast %22 : vector<32x1xf32> to vector<32x64xf32>
    %24 = arith.mulf %19, %23 : vector<32x64xf32>
    %c0_12 = arith.constant 0 : index
    %c0_13 = arith.constant 0 : index
    %25 = vector.load %arg4[%c0_12, %c0_13] : memref<1x64xf32, #tpu.memory_space<vmem>>, vector<1x64xf32>
    %26 = vector.broadcast %25 : vector<1x64xf32> to vector<32x64xf32>
    %27 = arith.mulf %24, %26 : vector<32x64xf32>
    %c0_14 = arith.constant 0 : index
    %c0_15 = arith.constant 0 : index
    %28 = vector.load %arg5[%c0_14, %c0_15] : memref<1x64xf32, #tpu.memory_space<vmem>>, vector<1x64xf32>
    %29 = vector.broadcast %28 : vector<1x64xf32> to vector<32x64xf32>
    %30 = arith.addf %27, %29 : vector<32x64xf32>
    %cst_16 = arith.constant 0.000000e+00 : f32
    %31 = vector.broadcast %cst_16 : f32 to vector<32x64xf32>
    %32 = arith.maximumf %30, %31 : vector<32x64xf32>
    %c0_17 = arith.constant 0 : index
    %c0_18 = arith.constant 0 : index
    %33 = vector.load %arg6[%c0_17, %c0_18] : memref<64x32xf32, #tpu.memory_space<vmem>>, vector<64x32xf32>
    %cst_19 = arith.constant dense<0.000000e+00> : vector<32x32xf32>
    %34 = tpu.matmul %32, %33, %cst_19 {dimension_numbers = #tpu.dot_dimension_numbers<[1], [0], [0], [1], [0, 0, 1, 1], [], []>} : vector<32x64xf32>, vector<64x32xf32>, vector<32x32xf32> -> vector<32x32xf32>
    %c0_20 = arith.constant 0 : index
    %c0_21 = arith.constant 0 : index
    %35 = vector.load %arg7[%c0_20, %c0_21] : memref<1x32xf32, #tpu.memory_space<vmem>>, vector<1x32xf32>
    %36 = vector.broadcast %35 : vector<1x32xf32> to vector<32x32xf32>
    %37 = arith.addf %34, %36 : vector<32x32xf32>
    %38 = vector.shape_cast %1 : vector<32x1xf32> to vector<32x1xf32>
    %39 = vector.broadcast %38 : vector<32x1xf32> to vector<32x32xf32>
    %40 = arith.mulf %37, %39 : vector<32x32xf32>
    %cst_22 = arith.constant 0.000000e+00 : f32
    %41 = vector.broadcast %cst_22 : f32 to vector<2x32x32xf32>
    %c0_23 = arith.constant 0 : index
    %c0_24 = arith.constant 0 : index
    %c0_25 = arith.constant 0 : index
    %42 = vector.load %arg10[%c0_23, %c0_24, %c0_25] : memref<2x32x32xf32, #tpu.memory_space<vmem>>, vector<2x32x32xf32>
    tpu.vector_store %arg10[%c0_23, %c0_24, %c0_25], %41 {strides = array<i32>} : memref<2x32x32xf32, #tpu.memory_space<vmem>>, vector<2x32x32xf32>,
    %c0_26 = arith.constant 0 : index
    %c0_27 = arith.constant 0 : index
    %43 = vector.load %arg8[%c0_26, %c0_27] : memref<5x32xf32, #tpu.memory_space<vmem>>, vector<5x32xf32>
    %44 = vector.extract_strided_slice %40 {offsets = [0, 0], sizes = [16, 32], strides = [1, 1]} : vector<32x32xf32> to vector<16x32xf32>
    %c0_28 = arith.constant 0 : index
    %c8 = arith.constant 8 : index
    %c0_29 = arith.constant 0 : index
    %45 = vector.load %arg10[%c0_28, %c8, %c0_29] : memref<2x32x32xf32, #tpu.memory_space<vmem>>, vector<1x16x32xf32>
    %46 = vector.shape_cast %45 : vector<1x16x32xf32> to vector<16x32xf32>
    %47 = vector.shape_cast %44 : vector<16x32xf32> to vector<1x16x32xf32>
    tpu.vector_store %arg10[%c0_28, %c8, %c0_29], %47 {strides = array<i32>} : memref<2x32x32xf32, #tpu.memory_space<vmem>>, vector<1x16x32xf32>,
    %48 = vector.extract_strided_slice %40 {offsets = [16, 0], sizes = [16, 32], strides = [1, 1]} : vector<32x32xf32> to vector<16x32xf32>
    %c1 = arith.constant 1 : index
    %c8_30 = arith.constant 8 : index
    %c0_31 = arith.constant 0 : index
    %49 = vector.load %arg10[%c1, %c8_30, %c0_31] : memref<2x32x32xf32, #tpu.memory_space<vmem>>, vector<1x16x32xf32>
    %50 = vector.shape_cast %49 : vector<1x16x32xf32> to vector<16x32xf32>
    %51 = vector.shape_cast %48 : vector<16x32xf32> to vector<1x16x32xf32>
    tpu.vector_store %arg10[%c1, %c8_30, %c0_31], %51 {strides = array<i32>} : memref<2x32x32xf32, #tpu.memory_space<vmem>>, vector<1x16x32xf32>,
    %cst_32 = arith.constant 0.000000e+00 : f32
    %52 = vector.broadcast %cst_32 : f32 to vector<16x32xf32>
    %c0_33 = arith.constant 0 : index
    %c6 = arith.constant 6 : index
    %c0_34 = arith.constant 0 : index
    %53 = vector.load %arg10[%c0_33, %c6, %c0_34] : memref<2x32x32xf32, #tpu.memory_space<vmem>>, vector<1x16x32xf32>
    %54 = vector.shape_cast %53 : vector<1x16x32xf32> to vector<16x32xf32>
    %55 = vector.extract_strided_slice %43 {offsets = [0, 0], sizes = [1, 32], strides = [1, 1]} : vector<5x32xf32> to vector<1x32xf32>
    %56 = vector.shape_cast %55 : vector<1x32xf32> to vector<32xf32>
    %57 = vector.shape_cast %56 : vector<32xf32> to vector<1x32xf32>
    %58 = vector.broadcast %57 : vector<1x32xf32> to vector<16x32xf32>
    %59 = arith.mulf %54, %58 : vector<16x32xf32>
    %60 = arith.addf %52, %59 : vector<16x32xf32>
    %c0_35 = arith.constant 0 : index
    %c7 = arith.constant 7 : index
    %c0_36 = arith.constant 0 : index
    %61 = vector.load %arg10[%c0_35, %c7, %c0_36] : memref<2x32x32xf32, #tpu.memory_space<vmem>>, vector<1x16x32xf32>
    %62 = vector.shape_cast %61 : vector<1x16x32xf32> to vector<16x32xf32>
    %63 = vector.extract_strided_slice %43 {offsets = [1, 0], sizes = [1, 32], strides = [1, 1]} : vector<5x32xf32> to vector<1x32xf32>
    %64 = vector.shape_cast %63 : vector<1x32xf32> to vector<32xf32>
    %65 = vector.shape_cast %64 : vector<32xf32> to vector<1x32xf32>
    %66 = vector.broadcast %65 : vector<1x32xf32> to vector<16x32xf32>
    %67 = arith.mulf %62, %66 : vector<16x32xf32>
    %68 = arith.addf %60, %67 : vector<16x32xf32>
    %c0_37 = arith.constant 0 : index
    %c8_38 = arith.constant 8 : index
    %c0_39 = arith.constant 0 : index
    %69 = vector.load %arg10[%c0_37, %c8_38, %c0_39] : memref<2x32x32xf32, #tpu.memory_space<vmem>>, vector<1x16x32xf32>
    %70 = vector.shape_cast %69 : vector<1x16x32xf32> to vector<16x32xf32>
    %71 = vector.extract_strided_slice %43 {offsets = [2, 0], sizes = [1, 32], strides = [1, 1]} : vector<5x32xf32> to vector<1x32xf32>
    %72 = vector.shape_cast %71 : vector<1x32xf32> to vector<32xf32>
    %73 = vector.shape_cast %72 : vector<32xf32> to vector<1x32xf32>
    %74 = vector.broadcast %73 : vector<1x32xf32> to vector<16x32xf32>
    %75 = arith.mulf %70, %74 : vector<16x32xf32>
    %76 = arith.addf %68, %75 : vector<16x32xf32>
    %c0_40 = arith.constant 0 : index
    %c9 = arith.constant 9 : index
    %c0_41 = arith.constant 0 : index
    %77 = vector.load %arg10[%c0_40, %c9, %c0_41] : memref<2x32x32xf32, #tpu.memory_space<vmem>>, vector<1x16x32xf32>
    %78 = vector.shape_cast %77 : vector<1x16x32xf32> to vector<16x32xf32>
    %79 = vector.extract_strided_slice %43 {offsets = [3, 0], sizes = [1, 32], strides = [1, 1]} : vector<5x32xf32> to vector<1x32xf32>
    %80 = vector.shape_cast %79 : vector<1x32xf32> to vector<32xf32>
    %81 = vector.shape_cast %80 : vector<32xf32> to vector<1x32xf32>
    %82 = vector.broadcast %81 : vector<1x32xf32> to vector<16x32xf32>
    %83 = arith.mulf %78, %82 : vector<16x32xf32>
    %84 = arith.addf %76, %83 : vector<16x32xf32>
    %c0_42 = arith.constant 0 : index
    %c10 = arith.constant 10 : index
    %c0_43 = arith.constant 0 : index
    %85 = vector.load %arg10[%c0_42, %c10, %c0_43] : memref<2x32x32xf32, #tpu.memory_space<vmem>>, vector<1x16x32xf32>
    %86 = vector.shape_cast %85 : vector<1x16x32xf32> to vector<16x32xf32>
    %87 = vector.extract_strided_slice %43 {offsets = [4, 0], sizes = [1, 32], strides = [1, 1]} : vector<5x32xf32> to vector<1x32xf32>
    %88 = vector.shape_cast %87 : vector<1x32xf32> to vector<32xf32>
    %89 = vector.shape_cast %88 : vector<32xf32> to vector<1x32xf32>
    %90 = vector.broadcast %89 : vector<1x32xf32> to vector<16x32xf32>
    %91 = arith.mulf %86, %90 : vector<16x32xf32>
    %92 = arith.addf %84, %91 : vector<16x32xf32>
    %93 = vector.extract_strided_slice %40 {offsets = [0, 0], sizes = [16, 32], strides = [1, 1]} : vector<32x32xf32> to vector<16x32xf32>
    %94 = arith.addf %92, %93 : vector<16x32xf32>
    %95 = vector.extract_strided_slice %39 {offsets = [0, 0], sizes = [16, 32], strides = [1, 1]} : vector<32x32xf32> to vector<16x32xf32>
    %96 = arith.mulf %94, %95 : vector<16x32xf32>
    %97 = vector.extract_strided_slice %0 {offsets = [0, 0], sizes = [16, 32], strides = [1, 1]} : vector<32x32xf32> to vector<16x32xf32>
    %98 = arith.addf %96, %97 : vector<16x32xf32>
    %c0_44 = arith.constant 0 : index
    %c0_45 = arith.constant 0 : index
    %99 = vector.load %arg9[%c0_44, %c0_45] : memref<32x32xf32, #tpu.memory_space<vmem>>, vector<16x32xf32>
    tpu.vector_store %arg9[%c0_44, %c0_45], %98 {strides = array<i32>} : memref<32x32xf32, #tpu.memory_space<vmem>>, vector<16x32xf32>,
    %cst_46 = arith.constant 0.000000e+00 : f32
    %100 = vector.broadcast %cst_46 : f32 to vector<16x32xf32>
    %c1_47 = arith.constant 1 : index
    %c6_48 = arith.constant 6 : index
    %c0_49 = arith.constant 0 : index
    %101 = vector.load %arg10[%c1_47, %c6_48, %c0_49] : memref<2x32x32xf32, #tpu.memory_space<vmem>>, vector<1x16x32xf32>
    %102 = vector.shape_cast %101 : vector<1x16x32xf32> to vector<16x32xf32>
    %103 = vector.extract_strided_slice %43 {offsets = [0, 0], sizes = [1, 32], strides = [1, 1]} : vector<5x32xf32> to vector<1x32xf32>
    %104 = vector.shape_cast %103 : vector<1x32xf32> to vector<32xf32>
    %105 = vector.shape_cast %104 : vector<32xf32> to vector<1x32xf32>
    %106 = vector.broadcast %105 : vector<1x32xf32> to vector<16x32xf32>
    %107 = arith.mulf %102, %106 : vector<16x32xf32>
    %108 = arith.addf %100, %107 : vector<16x32xf32>
    %c1_50 = arith.constant 1 : index
    %c7_51 = arith.constant 7 : index
    %c0_52 = arith.constant 0 : index
    %109 = vector.load %arg10[%c1_50, %c7_51, %c0_52] : memref<2x32x32xf32, #tpu.memory_space<vmem>>, vector<1x16x32xf32>
    %110 = vector.shape_cast %109 : vector<1x16x32xf32> to vector<16x32xf32>
    %111 = vector.extract_strided_slice %43 {offsets = [1, 0], sizes = [1, 32], strides = [1, 1]} : vector<5x32xf32> to vector<1x32xf32>
    %112 = vector.shape_cast %111 : vector<1x32xf32> to vector<32xf32>
    %113 = vector.shape_cast %112 : vector<32xf32> to vector<1x32xf32>
    %114 = vector.broadcast %113 : vector<1x32xf32> to vector<16x32xf32>
    %115 = arith.mulf %110, %114 : vector<16x32xf32>
    %116 = arith.addf %108, %115 : vector<16x32xf32>
    %c1_53 = arith.constant 1 : index
    %c8_54 = arith.constant 8 : index
    %c0_55 = arith.constant 0 : index
    %117 = vector.load %arg10[%c1_53, %c8_54, %c0_55] : memref<2x32x32xf32, #tpu.memory_space<vmem>>, vector<1x16x32xf32>
    %118 = vector.shape_cast %117 : vector<1x16x32xf32> to vector<16x32xf32>
    %119 = vector.extract_strided_slice %43 {offsets = [2, 0], sizes = [1, 32], strides = [1, 1]} : vector<5x32xf32> to vector<1x32xf32>
    %120 = vector.shape_cast %119 : vector<1x32xf32> to vector<32xf32>
    %121 = vector.shape_cast %120 : vector<32xf32> to vector<1x32xf32>
    %122 = vector.broadcast %121 : vector<1x32xf32> to vector<16x32xf32>
    %123 = arith.mulf %118, %122 : vector<16x32xf32>
    %124 = arith.addf %116, %123 : vector<16x32xf32>
    %c1_56 = arith.constant 1 : index
    %c9_57 = arith.constant 9 : index
    %c0_58 = arith.constant 0 : index
    %125 = vector.load %arg10[%c1_56, %c9_57, %c0_58] : memref<2x32x32xf32, #tpu.memory_space<vmem>>, vector<1x16x32xf32>
    %126 = vector.shape_cast %125 : vector<1x16x32xf32> to vector<16x32xf32>
    %127 = vector.extract_strided_slice %43 {offsets = [3, 0], sizes = [1, 32], strides = [1, 1]} : vector<5x32xf32> to vector<1x32xf32>
    %128 = vector.shape_cast %127 : vector<1x32xf32> to vector<32xf32>
    %129 = vector.shape_cast %128 : vector<32xf32> to vector<1x32xf32>
    %130 = vector.broadcast %129 : vector<1x32xf32> to vector<16x32xf32>
    %131 = arith.mulf %126, %130 : vector<16x32xf32>
    %132 = arith.addf %124, %131 : vector<16x32xf32>
    %c1_59 = arith.constant 1 : index
    %c10_60 = arith.constant 10 : index
    %c0_61 = arith.constant 0 : index
    %133 = vector.load %arg10[%c1_59, %c10_60, %c0_61] : memref<2x32x32xf32, #tpu.memory_space<vmem>>, vector<1x16x32xf32>
    %134 = vector.shape_cast %133 : vector<1x16x32xf32> to vector<16x32xf32>
    %135 = vector.extract_strided_slice %43 {offsets = [4, 0], sizes = [1, 32], strides = [1, 1]} : vector<5x32xf32> to vector<1x32xf32>
    %136 = vector.shape_cast %135 : vector<1x32xf32> to vector<32xf32>
    %137 = vector.shape_cast %136 : vector<32xf32> to vector<1x32xf32>
    %138 = vector.broadcast %137 : vector<1x32xf32> to vector<16x32xf32>
    %139 = arith.mulf %134, %138 : vector<16x32xf32>
    %140 = arith.addf %132, %139 : vector<16x32xf32>
    %141 = vector.extract_strided_slice %40 {offsets = [16, 0], sizes = [16, 32], strides = [1, 1]} : vector<32x32xf32> to vector<16x32xf32>
    %142 = arith.addf %140, %141 : vector<16x32xf32>
    %143 = vector.extract_strided_slice %39 {offsets = [16, 0], sizes = [16, 32], strides = [1, 1]} : vector<32x32xf32> to vector<16x32xf32>
    %144 = arith.mulf %142, %143 : vector<16x32xf32>
    %145 = vector.extract_strided_slice %0 {offsets = [16, 0], sizes = [16, 32], strides = [1, 1]} : vector<32x32xf32> to vector<16x32xf32>
    %146 = arith.addf %144, %145 : vector<16x32xf32>
    %c16 = arith.constant 16 : index
    %c0_62 = arith.constant 0 : index
    %147 = vector.load %arg9[%c16, %c0_62] : memref<32x32xf32, #tpu.memory_space<vmem>>, vector<16x32xf32>
    tpu.vector_store %arg9[%c16, %c0_62], %146 {strides = array<i32>} : memref<32x32xf32, #tpu.memory_space<vmem>>, vector<16x32xf32>,
    return
  }
}

</mosaic_0001>

<bundles_post_ra>
// kernel: tpu_custom_call.1
= control target key start
LH: loop header
LB: loop body
LE: loop exit
PB: predicated region body
PF: predicated region fallthrough
CT: control target
= control target key end

     0   :  { %s710_s0 = inlined_call_operand.vmem [shape: f32[32,32], index: 0, kind: input, shape index: {}]   ;;  %s711_s1 = inlined_call_operand.vmem [shape: f32[32,1], index: 1, kind: input, shape index: {}]   ;;  %s712_s2 = inlined_call_operand.vmem [shape: f32[32,64], index: 2, kind: input, shape index: {}]   ;;  %s713_s3 = inlined_call_operand.vmem [shape: f32[1,64], index: 3, kind: input, shape index: {}]   ;;  %s714_s4 = inlined_call_operand.vmem [shape: f32[1,64], index: 4, kind: input, shape index: {}]   ;;  %s715_s5 = inlined_call_operand.vmem [shape: f32[1,64], index: 5, kind: input, shape index: {}]   ;;  %s716_s6 = inlined_call_operand.vmem [shape: f32[64,32], index: 6, kind: input, shape index: {}]   ;;  %s717_s7 = inlined_call_operand.vmem [shape: f32[1,32], index: 7, kind: input, shape index: {}]   ;;  %s718_s8 = inlined_call_operand.vmem [shape: f32[5,32], index: 8, kind: input, shape index: {}]   ;;  %s719_s9 = inlined_call_operand.hbm [shape: f32[32,32], index: 9, kind: output, shape index: {}]  }
   0x1   :  { %v44_v0 = vld [vmem:[%s712_s2 + $0x18] sm:$0xff]  ;;  %v43_v1 = vld [vmem:[%s712_s2 + $0x10] sm:$0xff]  ;;  %v42_v2 = vld [vmem:[%s712_s2 + $0x8] sm:$0xff] }
   0x2   :  { %405 = vmatpush.msra.mxu3 %v44_v0  ;;  %74 = vmatpush.msra.mxu0 %v44_v0  ;;  %v41_v3 = vld [vmem:[%s712_s2] sm:$0xff] }
   0x4   :  { %406 = vmatpush.msra.mxu3 %v43_v1  ;;  %75 = vmatpush.msra.mxu0 %v43_v1 }
   0x5   :  { %14 = vsyncpa [#allocation4], 0  ;;  %v537_v4 = vld [vmem:[%s710_s0 + $0x8] sm:$0xff]  ;;  %vm49_vm0 = vcmask 261120   ;;  %v542_v5 = vld [vmem:[%s710_s0] sm:$0xff]  ;;  %vm91_vm1 = vcmask 523264  }
   0x6   :  { %407 = vmatpush.msra.mxu3 %v42_v2  ;;  %76 = vmatpush.msra.mxu0 %v42_v2  ;;  %v551_v6 = vld [vmem:[%s710_s0 + $0x10] sm:$0xff]  ;;  %v558_v7 = vld [vmem:[%s710_s0 + $0x18] sm:$0xff]  ;;  %v426_v9 = vld [vmem:[%s713_s3] ss:$0 sm:$0xff]  ;;  %v466_v21 = vmov 64.0   ;;  %s385_s30 = sshll.u32 %s719_s9, 4  ;;  %s386_s30 = int_to_ptr.hbm [resolvable:$true] %s385_s30 }
   0x7   :  { %430 = vrcp.f32 %v466_v21  ;;  %v214_v48 = vld [vmem:[%s716_s6 + $0x38] sm:$0xff]  ;;  %v213_v49 = vld [vmem:[%s716_s6 + $0x30] sm:$0xff]  ;;  %v212_v50 = vld [vmem:[%s716_s6 + $0x28] sm:$0xff]  ;;  %s470_s10 = smov 128   ;;  %s471_s9 = smov 8  }
   0x8   :  { %408 = vmatpush.msra.mxu3 %v41_v3  ;;  %77 = vmatpush.msra.mxu0 %v41_v3  ;;  %v211_v51 = vld [vmem:[%s716_s6 + $0x20] sm:$0xff]  ;;  %v210_v52 = vld [vmem:[%s716_s6 + $0x18] sm:$0xff]  ;;  %v209_v53 = vld [vmem:[%s716_s6 + $0x10] sm:$0xff] }
   0x9   :  { %398 = vmatmul.msk.f32.vlgmr.msra.gmra.mxu3 %vm49_vm0, %v537_v4  ;;  %397 = vmatmul.msk.f32.vlgmr.msra.gmra.mxu0 %vm49_vm0, %v542_v5  ;;  %v208_v54 = vld [vmem:[%s716_s6 + $0x8] sm:$0xff]  ;;  %v207_v55 = vld [vmem:[%s716_s6] sm:$0xff] }
   0xa   :  { %409 = vmatpush.msra.mxu2 %v214_v48  ;;  %239 = vmatpush.msra.mxu1 %v214_v48 }
   0xc   :  { %410 = vmatpush.msra.mxu2 %v213_v49  ;;  %240 = vmatpush.msra.mxu1 %v213_v49 }
   0xd   :  { %v431_v22 = vpop.eup %430 }
   0xe   :  { %v105_v23 = vmul.f32 64.0, %v431_v22  ;;  %vm109_vm2 = vweird.f32 %v431_v22  ;;  %411 = vmatpush.msra.mxu2 %v212_v50  ;;  %241 = vmatpush.msra.mxu1 %v212_v50 }
  0x10   :  { %v106_v24 = vsub.f32 1.0, %v105_v23  ;;  %412 = vmatpush.msra.mxu2 %v211_v51  ;;  %242 = vmatpush.msra.mxu1 %v211_v51 }
  0x11   :  { %399 = vmatmul.msk.f32.gmra.mxu3 %vm49_vm0, %v551_v6 }
  0x12   :  { %v107_v25 = vmul.f32 %v431_v22, %v106_v24  ;;  %413 = vmatpush.msra.mxu2 %v210_v52  ;;  %243 = vmatpush.msra.mxu1 %v210_v52 }
  0x14   :  { %v108_v26 = vadd.f32 %v431_v22, %v107_v25  ;;  %414 = vmatpush.msra.mxu2 %v209_v53  ;;  %244 = vmatpush.msra.mxu1 %v209_v53 }
  0x16   :  { %v569_v27 = vsel %vm109_vm2, %v431_v22, %v108_v26  ;;  %415 = vmatpush.msra.mxu2 %v208_v54  ;;  %245 = vmatpush.msra.mxu1 %v208_v54  ;;  %v427_v22 = vld [vmem:[%s714_s4] ss:$0 sm:$0xff] }
  0x18   :  { %416 = vmatpush.msra.mxu2 %v207_v55  ;;  %246 = vmatpush.msra.mxu1 %v207_v55 }
  0x19   :  { %400 = vmatmul.msk.f32.gmra.mxu3 %vm49_vm0, %v558_v7 }
  0x86   :  { %v79_v12 = vpop.f32.mrf.mxu0 }
  0x87   :  { %v80_v14 = vadd.f32 %v426_v9, %v79_v12  ;;  %v467_v12 = vmov 0  }
  0x88   :  { %425 = vset.pattern.permute.xlu1 %v467_v12  ;;  %424 = vset.pattern.permute.xlu0 %v467_v12 }
  0x89   :  { %v92_v17 = vsel %vm91_vm1, %v80_v14, 0.0  ;;  %423 = vset.pattern.permute.xlu2 %v467_v12 }
  0x8c   :  { %v82_v8 = vpop.f32.mrf.mxu3 }
  0x8d   :  { %v83_v19 = vadd.f32 %v426_v9, %v82_v8  ;;  %v39_v8 = vld [vmem:[%s711_s1 + $0x10] sm:$0xff] }
  0x8f   :  { %v95_v20 = vsel %vm91_vm1, %v83_v19, 0.0 }
  0x94   :  { %v85_v10 = vpop.f32.mrf.mxu3 }
  0x95   :  { %v86_v11 = vadd.f32 %v426_v9, %v85_v10 }
  0x97   :  { %v98_v13 = vsel %vm91_vm1, %v86_v11, 0.0 }
  0x98   :  { %99 = vadd.xlane.f32.xlu0 %v98_v13  ;;  %v37_v13 = vld [vmem:[%s711_s1] sm:$0xff] }
  0x9c   :  { %v88_v15 = vpop.f32.mrf.mxu3 }
  0x9d   :  { %v89_v16 = vadd.f32 %v426_v9, %v88_v15  ;;  %v38_v9 = vld [vmem:[%s711_s1 + $0x8] sm:$0xff] }
  0x9f   :  { %v101_v18 = vsel %vm91_vm1, %v89_v16, 0.0 }
  0xa0   :  { %102 = vadd.xlane.f32.xlu1 %v101_v18  ;;  %93 = vadd.xlane.f32.xlu0 %v92_v17 }
  0xa8   :  { %96 = vadd.xlane.f32.xlu1 %v95_v20 }
 0x10b   :  { %v100_v28 = vpop.xlane.xlu0 %99 }
 0x10c   :  { %v113_v29 = vmul.f32 %v569_v27, %v100_v28 }
 0x10e   :  { %v572_v30 = vsub.f32 %v86_v11, %v113_v29  ;;  %v40_v29 = vld [vmem:[%s711_s1 + $0x18] sm:$0xff] }
 0x110   :  { %v121_v31 = vmul.f32 %v572_v30, %v572_v30 }
 0x112   :  { %v129_v32 = vsel %vm91_vm1, %v121_v31, 0.0 }
 0x113   :  { %v103_v33 = vpop.xlane.xlu1 %102  ;;  %130 = vadd.xlane.f32.xlu2 %v129_v32  ;;  %v94_v34 = vpop.xlane.xlu0 %93 }
 0x114   :  { %v114_v35 = vmul.f32 %v569_v27, %v103_v33  ;;  %v111_v36 = vmul.f32 %v569_v27, %v94_v34 }
 0x116   :  { %v579_v37 = vsub.f32 %v89_v16, %v114_v35  ;;  %v581_v38 = vsub.f32 %v80_v14, %v111_v36 }
 0x118   :  { %v122_v39 = vmul.f32 %v579_v37, %v579_v37  ;;  %v119_v40 = vmul.f32 %v581_v38, %v581_v38 }
 0x11a   :  { %v132_v41 = vsel %vm91_vm1, %v122_v39, 0.0  ;;  %v123_v42 = vsel %vm91_vm1, %v119_v40, 0.0 }
 0x11b   :  { %v97_v43 = vpop.xlane.xlu1 %96  ;;  %133 = vadd.xlane.f32.xlu0 %v132_v41  ;;  %124 = vadd.xlane.f32.xlu2 %v123_v42 }
 0x11c   :  { %v112_v44 = vmul.f32 %v569_v27, %v97_v43 }
 0x11e   :  { %v590_v45 = vsub.f32 %v83_v19, %v112_v44 }
 0x120   :  { %v120_v46 = vmul.f32 %v590_v45, %v590_v45 }
 0x122   :  { %v126_v47 = vsel %vm91_vm1, %v120_v46, 0.0 }
 0x123   :  { %127 = vadd.xlane.f32.xlu1 %v126_v47 }
 0x12f   :  { %267 = vperm.xlu0 %424, %v38_v9   ;;  %v292_v9 = vld [vmem:[%s718_s8] sm:$0x1f]  ;;  %s469_s8 = smov [#allocation3]  }
 0x130   :  { %s383_s27 = sshll.u32 %s469_s8, 4  ;;  %s384_s27 = int_to_ptr.vmem [resolvable:$true] %s383_s27 }
 0x133   :  { %262 = vperm.xlu2 %423, %v37_v13  }
 0x13b   :  { %277 = vperm.xlu2 %423, %v40_v29  }
 0x13c   :  { %272 = vperm.xlu1 %425, %v39_v8  }
 0x186   :  { %v131_v56 = vpop.xlane.xlu2 %130 }
 0x187   :  { %v137_v57 = vmul.f32 %v131_v56, %v569_v27 }
 0x189   :  { %v141_v58 = vadd.f32 1e-05, %v137_v57 }
 0x18b   :  { %432 = vrsqrt.f32 %v141_v58  ;;  %vm169_vm4 = vweird.f32 %v141_v58 }
 0x18e   :  { %v125_v59 = vpop.xlane.xlu2 %124  ;;  %v134_v60 = vpop.xlane.xlu0 %133 }
 0x18f   :  { %v135_v61 = vmul.f32 %v125_v59, %v569_v27  ;;  %v138_v62 = vmul.f32 %v134_v60, %v569_v27  ;;  %v468_v60 = vmov 0.0  }
 0x190   :  { %284 = vst.msk [vmem:[#allocation2] sm:$0xff] %vm49_vm0, %v468_v60 }
 0x191   :  { %v433_v63 = vpop.eup %432  ;;  %v139_v0 = vadd.f32 1e-05, %v135_v61  ;;  %v142_v1 = vadd.f32 1e-05, %v138_v62  ;;  %287 = vst.msk [vmem:[#allocation2 + $0x18] sm:$0xff] %vm49_vm0, %v468_v60 }
 0x192   :  { %v164_v2 = vmul.f32 %v433_v63, %v141_v58  ;;  %vm170_vm3 = vweird.f32 %v433_v63  ;;  %288 = vst.msk [vmem:[#allocation2 + $0x20] sm:$0xff] %vm49_vm0, %v468_v60 }
 0x193   :  { %434 = vrsqrt.f32 %v139_v0  ;;  %vm171_vm5 = vmor %vm169_vm4, %vm170_vm3  ;;  %vm149_vm8 = vweird.f32 %v139_v0  ;;  %vm179_vm10 = vweird.f32 %v142_v1  ;;  %289 = vst.msk [vmem:[#allocation2 + $0x28] sm:$0xff] %vm49_vm0, %v468_v60 }
 0x194   :  { %v165_v3 = vmul.f32 %v433_v63, %v164_v2  ;;  %436 = vrsqrt.f32 %v142_v1  ;;  %291 = vst.msk [vmem:[#allocation2 + $0x38] sm:$0xff] %vm49_vm0, %v468_v60 }
 0x195   :  { %285 = vst.msk [vmem:[#allocation2 + $0x8] sm:$0xff] %vm49_vm0, %v468_v60 }
 0x196   :  { %v166_v10 = vmul.f32 0.5, %v165_v3  ;;  %v128_v11 = vpop.xlane.xlu1 %127  ;;  %286 = vst.msk [vmem:[#allocation2 + $0x10] sm:$0xff] %vm49_vm0, %v468_v60 }
 0x197   :  { %v136_v14 = vmul.f32 %v128_v11, %v569_v27  ;;  %v428_v27 = vld [vmem:[%s715_s5] ss:$0 sm:$0xff]  ;;  %290 = vst.msk [vmem:[#allocation2 + $0x30] sm:$0xff] %vm49_vm0, %v468_v60 }
 0x198   :  { %v167_v15 = vsub.f32 1.5, %v166_v10 }
 0x199   :  { %v435_v16 = vpop.eup %434  ;;  %v140_v17 = vadd.f32 1e-05, %v136_v14 }
 0x19a   :  { %v437_v18 = vpop.eup %436  ;;  %v168_v19 = vmul.f32 %v433_v63, %v167_v15  ;;  %v144_v20 = vmul.f32 %v435_v16, %v139_v0  ;;  %vm150_vm6 = vweird.f32 %v435_v16  ;;  %v300_v15 = vperm.slane %v292_v9, 0 }
 0x19b   :  { %v174_v21 = vmul.f32 %v437_v18, %v142_v1  ;;  %438 = vrsqrt.f32 %v140_v17  ;;  %vm180_vm7 = vweird.f32 %v437_v18  ;;  %vm151_vm9 = vmor %vm149_vm8, %vm150_vm6  ;;  %vm159_vm13 = vweird.f32 %v140_v17 }
 0x19c   :  { %v172_v23 = vsel %vm171_vm5, %v433_v63, %v168_v19  ;;  %v145_v24 = vmul.f32 %v435_v16, %v144_v20  ;;  %vm181_vm11 = vmor %vm179_vm10, %vm180_vm7  ;;  %v662_v63 = vpop.permute.xlu2 %262 }
 0x19d   :  { %v175_v25 = vmul.f32 %v437_v18, %v174_v21  ;;  %v185_v26 = vmul.f32 %v172_v23, %v572_v30 }
 0x19e   :  { %v146_v28 = vmul.f32 0.5, %v145_v24 }
 0x19f   :  { %v176_v31 = vmul.f32 0.5, %v175_v25  ;;  %v193_v32 = vmul.f32 %v427_v22, %v185_v26 }
 0x1a0   :  { %v147_v33 = vsub.f32 1.5, %v146_v28  ;;  %v314_v28 = vperm.slane %v292_v9, 2 }
 0x1a1   :  { %v439_v34 = vpop.eup %438  ;;  %v177_v35 = vsub.f32 1.5, %v176_v31  ;;  %v201_v36 = vadd.f32 %v428_v27, %v193_v32  ;;  %v677_v13 = vpop.permute.xlu0 %267  ;;  %v321_v31 = vperm.slane %v292_v9, 3 }
 0x1a2   :  { %v148_v39 = vmul.f32 %v435_v16, %v147_v33  ;;  %v154_v30 = vmul.f32 %v439_v34, %v140_v17  ;;  %vm160_vm12 = vweird.f32 %v439_v34 }
 0x1a3   :  { %v178_v40 = vmul.f32 %v437_v18, %v177_v35  ;;  %v205_v41 = vmax.f32 %v201_v36, 0.0  ;;  %vm161_vm14 = vmor %vm159_vm13, %vm160_vm12  ;;  %v328_v35 = vperm.slane %v292_v9, 4 }
 0x1a4   :  { %v152_v42 = vsel %vm151_vm9, %v435_v16, %v148_v39  ;;  %v155_v43 = vmul.f32 %v439_v34, %v154_v30  ;;  %v679_v14 = vpop.permute.xlu2 %277  ;;  %v307_v16 = vperm.slane %v292_v9, 1 }
 0x1a5   :  { %v182_v44 = vsel %vm181_vm11, %v437_v18, %v178_v40  ;;  %403 = vmatmul.msk.f32.vlgmr.msra.gmra.mxu2 %vm91_vm1, %v205_v41  ;;  %v183_v46 = vmul.f32 %v152_v42, %v581_v38 }
 0x1a6   :  { %v156_v47 = vmul.f32 0.5, %v155_v43  ;;  %v186_v48 = vmul.f32 %v182_v44, %v579_v37 }
 0x1a7   :  { %v191_v49 = vmul.f32 %v427_v22, %v183_v46 }
 0x1a8   :  { %v157_v50 = vsub.f32 1.5, %v156_v47  ;;  %v194_v51 = vmul.f32 %v427_v22, %v186_v48 }
 0x1a9   :  { %v199_v52 = vadd.f32 %v428_v27, %v191_v49 }
 0x1aa   :  { %v158_v53 = vmul.f32 %v439_v34, %v157_v50  ;;  %v202_v54 = vadd.f32 %v428_v27, %v194_v51 }
 0x1ab   :  { %v203_v55 = vmax.f32 %v199_v52, 0.0 }
 0x1ac   :  { %v162_v56 = vsel %vm161_vm14, %v439_v34, %v158_v53  ;;  %v206_v57 = vmax.f32 %v202_v54, 0.0 }
 0x1ad   :  { %401 = vmatmul.msk.f32.vlgmr.msra.gmra.mxu1 %vm91_vm1, %v203_v55  ;;  %v184_v58 = vmul.f32 %v162_v56, %v590_v45  ;;  %v429_v45 = vld [vmem:[%s717_s7] ss:$0 sm:$0xff] }
 0x1ae   :  { %404 = vmatmul.msk.f32.gmra.mxu2 %vm91_vm1, %v206_v57  ;;  %v660_v62 = vpop.permute.xlu1 %272 }
 0x1af   :  { %v192_v38 = vmul.f32 %v427_v22, %v184_v58 }
 0x1b1   :  { %v200_v37 = vadd.f32 %v428_v27, %v192_v38 }
 0x1b3   :  { %v204_v59 = vmax.f32 %v200_v37, 0.0 }
 0x1b5   :  { %402 = vmatmul.msk.f32.gmra.mxu1 %vm91_vm1, %v204_v59 }
 0x228   :  { %v254_v61 = vpop.f32.mrf.mxu2 }
 0x229   :  { %v255_v0 = vadd.f32 %v429_v45, %v254_v61 }
 0x22a   :  { %v248_v1 = vpop.f32.mrf.mxu1 }
 0x22b   :  { %v665_v2 = vmul.f32 %v660_v62, %v255_v0  ;;  %v249_v3 = vadd.f32 %v429_v45, %v248_v1 }
 0x22d   :  { %296 = vst.msk [vmem:[#allocation2 + $0x28] sm:$0xff] %vm49_vm0, %v665_v2  ;;  %v670_v8 = vmul.f32 %v662_v63, %v249_v3 }
 0x22f   :  { %293 = vst.msk [vmem:[#allocation2 + $0x8] sm:$0xff] %vm49_vm0, %v670_v8 }
 0x231   :  { %v257_v10 = vpop.f32.mrf.mxu2 }
 0x232   :  { %v258_v11 = vadd.f32 %v429_v45, %v257_v10  ;;  %v251_v12 = vpop.f32.mrf.mxu1 }
 0x233   :  { %v252_v17 = vadd.f32 %v429_v45, %v251_v12 }
 0x234   :  { %v682_v18 = vmul.f32 %v679_v14, %v258_v11  ;;  %v341_v19 = vld [vmem:[#allocation2 + $0x26] sm:$0xff] }
 0x235   :  { %v347_v20 = vld [vmem:[#allocation2 + $0x27] sm:$0xff]  ;;  %v685_v21 = vmul.f32 %v677_v13, %v252_v17  ;;  %v343_v24 = vmul.f32 %v341_v19, %v300_v15 }
 0x236   :  { %297 = vst.msk [vmem:[#allocation2 + $0x30] sm:$0xff] %vm49_vm0, %v682_v18  ;;  %v298_v22 = vld [vmem:[#allocation2 + $0x6] sm:$0xff]  ;;  %v349_v25 = vmul.f32 %v347_v20, %v307_v16 }
 0x237   :  { %v305_v23 = vld [vmem:[#allocation2 + $0x7] sm:$0xff]  ;;  %294 = vst.msk [vmem:[#allocation2 + $0x10] sm:$0xff] %vm49_vm0, %v685_v21  ;;  %v301_v26 = vmul.f32 %v300_v15, %v298_v22 }
 0x238   :  { %v308_v27 = vmul.f32 %v307_v16, %v305_v23  ;;  %v353_v29 = vld [vmem:[#allocation2 + $0x28] sm:$0xff]  ;;  %v351_v32 = vadd.f32 %v349_v25, %v343_v24 }
 0x239   :  { %v312_v33 = vld [vmem:[#allocation2 + $0x8] sm:$0xff]  ;;  %v355_v40 = vmul.f32 %v353_v29, %v314_v28 }
 0x23a   :  { %v310_v34 = vadd.f32 %v308_v27, %v301_v26  ;;  %v315_v47 = vmul.f32 %v314_v28, %v312_v33 }
 0x23b   :  { %v357_v48 = vadd.f32 %v355_v40, %v351_v32 }
 0x23c   :  { %v317_v38 = vadd.f32 %v315_v47, %v310_v34 }
 0x23d   :  { %v342_v36 = vld [vmem:[#allocation2 + $0x2e] sm:$0xff] }
 0x23e   :  { %v348_v39 = vld [vmem:[#allocation2 + $0x2f] sm:$0xff]  ;;  %v344_v41 = vmul.f32 %v342_v36, %v300_v15 }
 0x23f   :  { %v354_v30 = vld [vmem:[#allocation2 + $0x30] sm:$0xff]  ;;  %v350_v42 = vmul.f32 %v348_v39, %v307_v16 }
 0x240   :  { %v359_v43 = vld [vmem:[#allocation2 + $0x29] sm:$0xff]  ;;  %v360_v44 = vld [vmem:[#allocation2 + $0x31] sm:$0xff]  ;;  %v356_v53 = vmul.f32 %v354_v30, %v314_v28 }
 0x241   :  { %v365_v46 = vld [vmem:[#allocation2 + $0x2a] sm:$0xff]  ;;  %v361_v49 = vmul.f32 %v359_v43, %v321_v31  ;;  %v352_v52 = vadd.f32 %v350_v42, %v344_v41  ;;  %v366_v54 = vld [vmem:[#allocation2 + $0x32] sm:$0xff]  ;;  %v362_v37 = vmul.f32 %v360_v44, %v321_v31 }
 0x242   :  { %v299_v50 = vld [vmem:[#allocation2 + $0xe] sm:$0xff]  ;;  %v367_v60 = vmul.f32 %v365_v46, %v328_v35  ;;  %v368_v10 = vmul.f32 %v366_v54, %v328_v35 }
 0x243   :  { %v306_v51 = vld [vmem:[#allocation2 + $0xf] sm:$0xff]  ;;  %v302_v55 = vmul.f32 %v300_v15, %v299_v50  ;;  %v363_v59 = vadd.f32 %v361_v49, %v357_v48  ;;  %v358_v0 = vadd.f32 %v356_v53, %v352_v52 }
 0x244   :  { %v309_v56 = vmul.f32 %v307_v16, %v306_v51  ;;  %v313_v57 = vld [vmem:[#allocation2 + $0x10] sm:$0xff] }
 0x245   :  { %v320_v58 = vld [vmem:[#allocation2 + $0x11] sm:$0xff]  ;;  %v319_v45 = vld [vmem:[#allocation2 + $0x9] sm:$0xff]  ;;  %v316_v3 = vmul.f32 %v314_v28, %v313_v57  ;;  %v369_v11 = vadd.f32 %v367_v60, %v363_v59  ;;  %v364_v19 = vadd.f32 %v362_v37, %v358_v0 }
 0x246   :  { %v326_v61 = vld [vmem:[#allocation2 + $0xa] sm:$0xff]  ;;  %v311_v1 = vadd.f32 %v309_v56, %v302_v55  ;;  %v322_v9 = vmul.f32 %v321_v31, %v319_v45  ;;  %v323_v12 = vmul.f32 %v321_v31, %v320_v58  ;;  %v327_v17 = vld [vmem:[#allocation2 + $0x12] sm:$0xff] }
 0x247   :  { %v329_v16 = vmul.f32 %v328_v35, %v326_v61  ;;  %v371_v22 = vadd.f32 %v369_v11, %v665_v2  ;;  %v370_v23 = vadd.f32 %v368_v10, %v364_v19  ;;  %v330_v25 = vmul.f32 %v328_v35, %v327_v17 }
 0x248   :  { %v318_v20 = vadd.f32 %v316_v3, %v311_v1  ;;  %v324_v15 = vadd.f32 %v322_v9, %v317_v38 }
 0x249   :  { %v373_v27 = vmul.f32 %v371_v22, %v660_v62  ;;  %v372_v29 = vadd.f32 %v370_v23, %v682_v18 }
 0x24a   :  { %v325_v24 = vadd.f32 %v323_v12, %v318_v20  ;;  %v331_v26 = vadd.f32 %v329_v16, %v324_v15 }
 0x24b   :  { %v375_v31 = vadd.f32 %v373_v27, %v551_v6  ;;  %v374_v33 = vmul.f32 %v372_v29, %v679_v14 }
 0x24c   :  { %v332_v28 = vadd.f32 %v330_v25, %v325_v24  ;;  %v333_v32 = vadd.f32 %v331_v26, %v670_v8 }
 0x24d   :  { %377 = vst.msk [vmem:[#allocation3 + $0x10] sm:$0xff] %vm49_vm0, %v375_v31  ;;  %v376_v62 = vadd.f32 %v374_v33, %v558_v7 }
 0x24e   :  { %v334_v34 = vadd.f32 %v332_v28, %v685_v21  ;;  %v335_v36 = vmul.f32 %v333_v32, %v662_v63 }
 0x24f   :  { %378 = vst.msk [vmem:[#allocation3 + $0x18] sm:$0xff] %vm49_vm0, %v376_v62 }
 0x250   :  { %v336_v2 = vmul.f32 %v334_v34, %v677_v13  ;;  %v337_v6 = vadd.f32 %v335_v36, %v542_v5 }
 0x252   :  { %v338_v63 = vadd.f32 %v336_v2, %v537_v4  ;;  %339 = vst.msk [vmem:[#allocation3] sm:$0xff] %vm49_vm0, %v337_v6 }
 0x254   :  { %340 = vst.msk [vmem:[#allocation3 + $0x8] sm:$0xff] %vm49_vm0, %v338_v63 }
 0x255   :  { %391 = dma.vmem_to_hbm [thread:$0]  %s384_s27, 512, %s386_s30, [#allocation4], %s470_s10, %s470_s10, %s471_s9  }
 0x256   :  { %464 = dma.done.wait [#allocation4], 512  }
 0x257   :  { %465 = vsyncadd [#allocation4], 4294966784 }
 0x258   :  { %396 = vsyncpa [#allocation4], 1 }

</bundles_post_ra>
